<compile_context>
chip_gen: v7x
topology: tpu7x:2x2x1
jax: 0.10.0
libtpu: 0.0.40
codegen_flags: <defaults>
</compile_context>

<pallas_src>
import math
import functools

import jax
import jax.numpy as jnp
from jax.experimental import pallas as pl
from jax.experimental.pallas import tpu as pltpu


def make_pe(d_model: int, max_len: int) -> jnp.ndarray:
    """Build the (1, max_len, d_model) sinusoidal positional-encoding buffer."""
    position = jnp.arange(max_len, dtype=jnp.float32)[:, None]            # (L, 1)
    div_term = jnp.exp(
        jnp.arange(0, d_model, 2, dtype=jnp.float32)
        * (-math.log(10000.0) / d_model)
    )                                                                      # (D/2,)
    angles = position * div_term                                           # (L, D/2)
    pe = jnp.zeros((max_len, d_model), dtype=jnp.float32)
    pe = pe.at[:, 0::2].set(jnp.sin(angles))
    pe = pe.at[:, 1::2].set(jnp.cos(angles))
    return pe[None, :, :]                                                  # (1, L, D)


def _hash_u32(x, seed_u32):
    """Stateless 32-bit mix (lowbias32-style) of a counter + seed -> uniform bits."""
    x = x + seed_u32 * jnp.uint32(2654435761)     # golden-ratio seed mix
    x = x ^ (x >> 16)
    x = x * jnp.uint32(0x21F0AAAD)
    x = x ^ (x >> 15)
    x = x * jnp.uint32(0x735A2D97)
    x = x ^ (x >> 15)
    return x


def _posenc_kernel(seed_ref, x_ref, pe_ref, o_ref, *, p: float, training: bool,
                   n_cols: int):
    """One (TB, TN) tile: out = dropout(x + pe). pe row broadcasts over TB rows."""
    y = x_ref[...].astype(jnp.float32) + pe_ref[...].astype(jnp.float32)   # (TB, TN)

    if training and p > 0.0:
        tb, tn = x_ref.shape
        i = pl.program_id(0)
        j = pl.program_id(1)
        # Global flat element index -> dropout mask is independent of tiling.
        row = jax.lax.broadcasted_iota(jnp.int32, (tb, tn), 0) + i * tb
        col = jax.lax.broadcasted_iota(jnp.int32, (tb, tn), 1) + j * tn
        gidx = (row * n_cols + col).astype(jnp.uint32)
        seed_u32 = seed_ref[0].astype(jnp.uint32)
        bits = _hash_u32(gidx, seed_u32)
        # keep iff U(0,1) >= p  <=>  bits >= p * 2^32   (p quantized to 1/2^32)
        threshold = jnp.uint32(min(int(p * 4294967296.0), 4294967295))
        keep = bits >= threshold
        scale = jnp.float32(1.0 / (1.0 - p))
        y = jnp.where(keep, y * scale, jnp.float32(0.0))

    o_ref[...] = y.astype(o_ref.dtype)


def _choose_block(dim: int, align: int, cap: int) -> int:
    """Largest block b with dim % b == 0 and (b == dim or b % align == 0), b <= cap.

    Falls back to the full dim (always correct) if no aligned divisor fits.
    """
    if dim <= cap:
        return dim
    b = (cap // align) * align
    while b >= align:
        if dim % b == 0:
            return b
        b -= align
    return dim


def positional_encoding(x: jnp.ndarray,
                        pe: jnp.ndarray,
                        *,
                        p: float = 0.1,
                        training: bool = False,
                        seed: int = 0) -> jnp.ndarray:
    """x: (B, S, D); pe: (1, S, D). Returns dropout(x + pe) with x's dtype."""
    B, S, D = x.shape
    assert pe.shape == (1, S, D)
    N = S * D

    # Lane-dense view: last axis becomes S*D (multiple of 128 for typical D).
    x2 = x.reshape(B, N)
    pe2 = pe.reshape(1, N)

    itemsize = jnp.dtype(x.dtype).itemsize
    tile_bytes = 2 * 1024 * 1024                      # ~2 MiB per x tile
    tn = _choose_block(N, 128, max(128, tile_bytes // itemsize))
    tb_cap = max(1, tile_bytes // (tn * itemsize))
    tb = _choose_block(B, 8, tb_cap)
    grid = (B // tb, N // tn)

    seed_arr = jnp.array([seed], dtype=jnp.int32)
    kernel = functools.partial(_posenc_kernel, p=p, training=training, n_cols=N)

    cost = pl.CostEstimate(
        flops=B * N,                                  # one add per element
        transcendentals=0,
        bytes_accessed=(2 * B * N + N) * itemsize,    # read x, write out, read pe
    )

    out2 = pl.pallas_call(
        kernel,
        out_shape=jax.ShapeDtypeStruct((B, N), x.dtype),
        grid_spec=pltpu.PrefetchScalarGridSpec(
            num_scalar_prefetch=1,
            grid=grid,
            in_specs=[
                # x: (tb, tn) tile per grid step.
                pl.BlockSpec((tb, tn), lambda i, j, seed: (i, j)),
                # pe: single row, broadcast over the batch axis (constant in i).
                pl.BlockSpec((1, tn), lambda i, j, seed: (0, j)),
            ],
            out_specs=pl.BlockSpec((tb, tn), lambda i, j, seed: (i, j)),
        ),
        compiler_params=pltpu.CompilerParams(
            dimension_semantics=("parallel", "parallel"),
        ),
        cost_estimate=cost,
    )(seed_arr, x2, pe2)

    return out2.reshape(B, S, D)


if __name__ == "__main__":
    # Small shapes consistent with the module: d_model=32, max_len=8, batch=2.
    B, S, D = 2, 8, 32
    key = jax.random.PRNGKey(0)
    x = jax.random.normal(key, (B, S, D), dtype=jnp.float32)

    pe = make_pe(d_model=D, max_len=S)

    # Eval-mode forward (dropout is identity) -- numerically checkable.
    out = positional_encoding(x, pe, p=0.1, training=False)
    out = jax.block_until_ready(out)

    ref = x + pe
    assert out.shape == (B, S, D)
    assert jnp.allclose(out, ref, atol=1e-6), "mismatch vs reference (eval mode)"

    # Training-mode forward (deterministic hash-based dropout).
    p_drop = 0.1
    out_tr = positional_encoding(x, pe, p=p_drop, training=True, seed=123)
    out_tr = jax.block_until_ready(out_tr)

    # Every element must be either 0 (dropped) or (x+pe)/(1-p) (kept & scaled).
    kept_ref = (x + pe) / (1.0 - p_drop)
    valid = jnp.where(out_tr == 0.0, True, jnp.isclose(out_tr, kept_ref, atol=1e-5))
    assert bool(jnp.all(valid)), "training-mode dropout output has invalid values"

    print("KERNEL_OK")
</pallas_src>

<mosaic_0001>
module attributes {stable_mosaic.version = 11 : i64} {
  func.func @_posenc_kernel(%arg0: i32, %arg1: i32, %arg2: memref<1xi32, #tpu.memory_space<smem>>, %arg3: memref<2x256xf32, #tpu.memory_space<vmem>>, %arg4: memref<1x256xf32, #tpu.memory_space<vmem>>, %arg5: memref<2x256xf32, #tpu.memory_space<vmem>>) attributes {dimension_semantics = [#tpu.dimension_semantics<parallel>, #tpu.dimension_semantics<parallel>], iteration_bounds = array<i64: 1, 1>, scalar_prefetch = 1 : i64, scratch_operands = 0 : i64, tpu.core_type = #tpu.core_type<tc>, window_params = [{transform_indices = @transform_0, window_bounds = array<i64: 2, 256>}, {transform_indices = @transform_1, window_bounds = array<i64: 1, 256>}, {transform_indices = @transform_2, window_bounds = array<i64: 2, 256>}]} {
    %c0 = arith.constant 0 : index
    %c0_0 = arith.constant 0 : index
    %0 = vector.load %arg3[%c0, %c0_0] : memref<2x256xf32, #tpu.memory_space<vmem>>, vector<2x256xf32>
    %c0_1 = arith.constant 0 : index
    %c0_2 = arith.constant 0 : index
    %1 = vector.load %arg4[%c0_1, %c0_2] : memref<1x256xf32, #tpu.memory_space<vmem>>, vector<1x256xf32>
    %2 = vector.broadcast %1 : vector<1x256xf32> to vector<2x256xf32>
    %3 = arith.addf %0, %2 : vector<2x256xf32>
    %c0_3 = arith.constant 0 : index
    %c0_4 = arith.constant 0 : index
    %4 = vector.load %arg5[%c0_3, %c0_4] : memref<2x256xf32, #tpu.memory_space<vmem>>, vector<2x256xf32>
    tpu.vector_store %arg5[%c0_3, %c0_4], %3 {strides = array<i32>} : memref<2x256xf32, #tpu.memory_space<vmem>>, vector<2x256xf32>,
    return
  }
  func.func @transform_0(%arg0: i32, %arg1: i32, %arg2: memref<1xi32, #tpu.memory_space<smem>>) -> (i32, i32) {
    %c0_i32 = arith.constant 0 : i32
    return %arg0, %arg1 : i32, i32
  }
  func.func @transform_1(%arg0: i32, %arg1: i32, %arg2: memref<1xi32, #tpu.memory_space<smem>>) -> (i32, i32) {
    %c0_i32 = arith.constant 0 : i32
    %c0_i32_0 = arith.constant 0 : i32
    return %c0_i32, %arg1 : i32, i32
  }
  func.func @transform_2(%arg0: i32, %arg1: i32, %arg2: memref<1xi32, #tpu.memory_space<smem>>) -> (i32, i32) {
    %c0_i32 = arith.constant 0 : i32
    return %arg0, %arg1 : i32, i32
  }
}

</mosaic_0001>

<bundles_post_ra>
// kernel: tpu_custom_call.1
= control target key start
LH: loop header
LB: loop body
LE: loop exit
PB: predicated region body
PF: predicated region fallthrough
CT: control target
= control target key end

     0   :  { %9 = vsyncpa [#allocation5], 0  ;;  %s164_s0 = inlined_call_operand.<no memory space> [shape: s32[1], index: 0, kind: input, shape index: {}]   ;;  %s165_s1 = inlined_call_operand.hbm [shape: f32[2,256], index: 1, kind: input, shape index: {}]   ;;  %s166_s2 = inlined_call_operand.vmem [shape: f32[1,256], index: 2, kind: input, shape index: {}]   ;;  %s167_s3 = inlined_call_operand.hbm [shape: f32[2,256], index: 3, kind: output, shape index: {}]  }
   0x1   :  { %10 = vsyncpa [#allocation6], 0  ;;  %s114_s12 = smov [#allocation4]   ;;  %s66_s16 = scalar_lea.hbm %s165_s1, 64 }
   0x2   :  { %s17_s13 = sshll.u32 %s114_s12, 4  ;;  %p67_p0 = scmp.ne.s32.totalorder %s165_s1, %s66_s16  ;;  %s18_s13 = int_to_ptr.vmem [resolvable:$true] %s17_s13 }
   0x3   :  { %p70_p1 = scmp.lt.u32.totalorder %s66_s16, %s165_s1 }
   0x5   :  { %p72_p2 = pnand %p70_p1, %p67_p0 }
   0x7   :  { %75 = shalt.err (!%p72_p2)
}
   0x8   :  { %s76_s20 = scalar_lea.vmem %s18_s13, 64  ;;  %p81_p4 = scmp.lt.s32.totalorder %s18_s13, %s18_s13 }
   0x9   :  { %p77_p3 = scmp.ne.s32.totalorder %s18_s13, %s76_s20  ;;  %p82_p5 = scmp.lt.s32.totalorder %s76_s20, %s76_s20 }
   0xb   :  { %p83_p6 = por %p82_p5, %p81_p4 }
   0xd   :  { %p84_p7 = pnand %p83_p6, %p77_p3 }
   0xf   :  { %87 = shalt.err (!%p84_p7)
}
  0x10   :  { %20 = dma.hbm_to_vmem [thread:$0]  %s165_s1, 64, %s18_s13, [#allocation5]  }
  0x11   :  { %110 = dma.done.wait [#allocation5], 64  }
  0x12   :  { %111 = vsyncadd [#allocation5], 4294967232  ;;  %v29_v0 = vlaneseq  ;;  %v115_v1 = vmov 1983009808   ;;  %v27_v7 = vld [vmem:[%s166_s2] sm:$0x3] }
  0x13   :  { %v39_v2 = vunpack.c.l.s4 %v115_v1  ;;  %v26_v12 = vld [vmem:[#allocation4] sm:$0xf]  ;;  %s116_s25 = smov [#allocation7]  }
  0x14   :  { %v30_v3 = vshrl.u32 %v29_v0, 7  ;;  %s54_s1 = sshll.u32 %s116_s25, 4  ;;  %s55_s1 = int_to_ptr.vmem [resolvable:$true] %s54_s1 }
  0x15   :  { %v40_v6 = vunpack.c.0.s8 %v39_v2  ;;  %s88_s26 = scalar_lea.vmem %s55_s1, 64  ;;  %p93_p9 = scmp.lt.s32.totalorder %s55_s1, %s55_s1 }
  0x16   :  { %v31_v4 = vsub.s32 0, %v30_v3  ;;  %v35_v5 = vsub.s32 1, %v30_v3  ;;  %p89_p8 = scmp.ne.s32.totalorder %s55_s1, %s88_s26  ;;  %p94_p10 = scmp.lt.s32.totalorder %s88_s26, %s88_s26 }
  0x17   :  { %v43_v10 = vsub.s32 %v40_v6, %v30_v3 }
  0x18   :  { %v32_v8 = vrot.slane %v27_v7, %v31_v4  ;;  %v36_v9 = vrot.slane %v27_v7, %v35_v5  ;;  %p95_p11 = por %p94_p10, %p93_p9 }
  0x1a   :  { %v37_v11 = vcombine.low %v32_v8, %v36_v9  ;;  %p96_p12 = pnand %p95_p11, %p89_p8 }
  0x1c   :  { %v44_v13 = vrot.slane %v37_v11, %v43_v10 }
  0x1e   :  { %v46_v14 = vadd.f32 %v44_v13, %v26_v12 }
  0x20   :  { %47 = vst [vmem:[#allocation7] sm:$0xf] %v46_v14 }
  0x21   :  { %99 = shalt.err (!%p96_p12)
}
  0x22   :  { %s100_s28 = scalar_lea.hbm %s167_s3, 64 }
  0x23   :  { %p101_p13 = scmp.ne.s32.totalorder %s167_s3, %s100_s28  ;;  %p104_p0 = scmp.lt.u32.totalorder %s100_s28, %s167_s3 }
  0x25   :  { %p106_p1 = pnand %p104_p0, %p101_p13 }
  0x27   :  { %109 = shalt.err (!%p106_p1)
}
  0x28   :  { %57 = dma.vmem_to_hbm [thread:$0]  %s55_s1, 64, %s167_s3, [#allocation6]  }
  0x29   :  { %112 = dma.done.wait [#allocation6], 64  }
  0x2a   :  { %113 = vsyncadd [#allocation6], 4294967232 }
  0x2b   :  { %61 = vsyncpa [#allocation5], 1 }
  0x2c   :  { %62 = vsyncpa [#allocation6], 1 }

</bundles_post_ra>
